<compile_context>
chip_gen: v7x
topology: tpu7x:2x2x1
jax: 0.10.0
libtpu: 0.0.40
codegen_flags: <defaults>
</compile_context>

<pallas_src>
import functools

import jax
import jax.numpy as jnp
from jax.experimental import pallas as pl
from jax.experimental.pallas import tpu as pltpu

PAD_IDX = 0                       # Offsets.PAD

_LANE = 128                       # vreg lane width
_SUBLANE = 8
_KT = 256                         # one-hot K tile (full MXU K on v6e/v7x)
_MAX_TOKENS_PER_CALL = 32768      # caps Path-B scalar-prefetch SMEM footprint


def _round_up(a, b):
    return (a + b - 1) // b * b


def _device_vmem_bytes():
    """Physical VMEM per TensorCore; conservative fallback if unqueryable."""
    try:
        return int(pltpu.get_tpu_info().vmem_capacity_bytes)
    except Exception:
        return 64 << 20           # v7x per-TC size (smallest current gen)


# ---------------------------------------------------------------------------
# Path A: small vocab -> table resident in VMEM, gather = one-hot matmul (MXU)
# ---------------------------------------------------------------------------
def _embed_onehot_kernel(ids_ref, w_ref, out_ref, *, kt):
    tb = ids_ref.shape[0]
    vsz_pad, dsz_pad = w_ref.shape
    ids = ids_ref[...]                                       # (tb, 1) int32

    acc = jnp.zeros((tb, dsz_pad), jnp.float32)
    # Static K-tiling: the VPU builds the (tb, kt) one-hot slice for tile c
    # while the MXU consumes tile c-1; also bounds one-hot vreg/VMEM pressure.
    for c in range(vsz_pad // kt):
        iota = jax.lax.broadcasted_iota(jnp.int32, (tb, kt), 1) + c * kt
        onehot = (ids == iota).astype(w_ref.dtype)           # (tb, kt)
        acc = acc + jax.lax.dot_general(
            onehot, w_ref[c * kt:(c + 1) * kt, :],
            dimension_numbers=(((1,), (0,)), ((), ())),
            preferred_element_type=jnp.float32,
            # Exact f32 row reproduction even on MXUs with no native f32 path
            # (v7x); avoids silent bf16 rounding at default precision.
            precision=jax.lax.Precision.HIGHEST,
        )
    out_ref[...] = acc.astype(out_ref.dtype)


def _lookup_resident(flat_ids, weights, tb, device_vmem):
    n_tok = flat_ids.shape[0]
    vsz, dsz = weights.shape
    itemsize = weights.dtype.itemsize
    vsz_pad = _round_up(vsz, _KT)          # lane/MXU-K dense one-hot compares
    dsz_pad = _round_up(dsz, _LANE)        # lane-dense (unmasked) output stores
    n_pad = _round_up(n_tok, tb)
    nb = n_pad // tb

    ids = jnp.pad(flat_ids, (0, n_pad - n_tok), constant_values=PAD_IDX)
    ids2d = ids.reshape(n_pad, 1)
    if (vsz_pad, dsz_pad) != (vsz, dsz):
        # ids are clamped to [0, vsz-1], so padded rows are never selected.
        w = jnp.pad(weights, ((0, vsz_pad - vsz), (0, dsz_pad - dsz)))
    else:
        w = weights

    need = (
        2 * vsz_pad * dsz_pad * itemsize     # resident table (double-buffered)
        + 2 * tb * dsz_pad * itemsize        # double-buffered output block
        + 2 * tb * 4                         # double-buffered id block
        + tb * _KT * itemsize                # one-hot K-slice
        + tb * dsz_pad * 4                   # f32 accumulator
        + (4 << 20)                          # margin
    )
    # Always pass the limit (v5e default scoped VMEM is only 16 MiB) and cap
    # it at the actual device capacity minus headroom (64 MiB on v7x).
    vmem_limit = max(16 << 20, min(int(need), device_vmem - (8 << 20)))

    out = pl.pallas_call(
        functools.partial(_embed_onehot_kernel, kt=_KT),
        out_shape=jax.ShapeDtypeStruct((n_pad, dsz_pad), weights.dtype),
        grid_spec=pltpu.PrefetchScalarGridSpec(
            num_scalar_prefetch=0,
            grid=(nb,),
            in_specs=[
                pl.BlockSpec((tb, 1), lambda i: (i, 0)),             # token ids
                pl.BlockSpec((vsz_pad, dsz_pad), lambda i: (0, 0)),  # table
            ],
            out_specs=pl.BlockSpec((tb, dsz_pad), lambda i: (i, 0)),
        ),
        compiler_params=pltpu.CompilerParams(
            dimension_semantics=("parallel",),
            vmem_limit_bytes=vmem_limit,
        ),
    )(ids2d, w)
    return out[:n_tok, :dsz]


# ---------------------------------------------------------------------------
# Path B: large vocab -> table stays in HBM, chunked double-buffered DMA gather
# ---------------------------------------------------------------------------
def _embed_dma_gather_kernel(idx_ref, w_hbm, out_ref, sems, *, tb, chunk):
    # Invariant: every DMA is a (1, dsz) copy of identical size, and all DMAs
    # of a chunk share one semaphore slot, so size-matched dummy-src wait
    # descriptors are valid.  Rows are written straight into the pipelined
    # output block (no VMEM->VMEM staging copy), and chunk c+1's descriptors
    # are issued while chunk c's copies are awaited.
    base = pl.program_id(0) * tb
    n_chunks = tb // chunk

    def issue(c):
        slot = c % 2
        for k in range(chunk):            # unrolled at trace time
            r = c * chunk + k
            row = idx_ref[base + r]       # SMEM scalar read
            pltpu.make_async_copy(
                w_hbm.at[pl.ds(row, 1), :],
                out_ref.at[pl.ds(r, 1), :],
                sems.at[slot],
            ).start()

    def wait(c):
        slot = c % 2
        for k in range(chunk):
            r = c * chunk + k
            pltpu.make_async_copy(
                w_hbm.at[pl.ds(0, 1), :],          # dummy src, size-matched
                out_ref.at[pl.ds(r, 1), :],
                sems.at[slot],
            ).wait()

    issue(0)
    for c in range(n_chunks):
        if c + 1 < n_chunks:
            issue(c + 1)
        wait(c)


def _lookup_hbm_gather(flat_ids, weights, tb):
    n_tok = flat_ids.shape[0]
    # Bound the scalar-prefetched id array per call (1-D SMEM arrays pad to
    # next_pow2(4N) bytes, so unbounded B*T would blow SMEM).
    if n_tok > _MAX_TOKENS_PER_CALL:
        parts = [
            _lookup_hbm_gather(flat_ids[s:s + _MAX_TOKENS_PER_CALL], weights, tb)
            for s in range(0, n_tok, _MAX_TOKENS_PER_CALL)
        ]
        return jnp.concatenate(parts, axis=0)

    vsz, dsz = weights.shape
    n_pad = _round_up(n_tok, tb)
    nb = n_pad // tb
    chunk = 32 if tb % 32 == 0 else _SUBLANE   # chunk always divides tb

    ids = jnp.pad(flat_ids, (0, n_pad - n_tok), constant_values=PAD_IDX)

    out = pl.pallas_call(
        functools.partial(_embed_dma_gather_kernel, tb=tb, chunk=chunk),
        # No dsz padding and no table copy: gather exactly dsz bytes per row.
        out_shape=jax.ShapeDtypeStruct((n_pad, dsz), weights.dtype),
        grid_spec=pltpu.PrefetchScalarGridSpec(
            num_scalar_prefetch=1,                          # token ids -> SMEM
            grid=(nb,),
            in_specs=[pl.BlockSpec(memory_space=pl.ANY)],   # table stays in HBM
            out_specs=pl.BlockSpec((tb, dsz), lambda i, idx: (i, 0)),
            scratch_shapes=[pltpu.SemaphoreType.DMA((2,))],  # one per chunk slot
        ),
        compiler_params=pltpu.CompilerParams(
            dimension_semantics=("parallel",),
        ),
    )(ids, weights)
    return out[:n_tok]


# ---------------------------------------------------------------------------
# Public wrapper (forward pass of LookupTableEmbeddings, dropin=0.0)
# ---------------------------------------------------------------------------
def lookup_table_embeddings(x, weights, *, token_block=None, force_hbm_gather=False):
    """Embedding lookup: (B, T) int ids + (vsz, dsz) table -> (B, T, dsz)."""
    B, T = x.shape
    vsz, dsz = weights.shape
    itemsize = weights.dtype.itemsize

    # Clamp ids: there is no runtime bounds check on either gather path.
    flat_ids = jnp.clip(x.reshape(-1).astype(jnp.int32), 0, vsz - 1)
    n_tok = flat_ids.shape[0]

    device_vmem = _device_vmem_bytes()
    big_vmem = device_vmem >= (96 << 20)       # v5e/v6e (128 MiB) vs v7x (64 MiB)
    dsz_pad = _round_up(dsz, _LANE)

    table_bytes = _round_up(vsz, _KT) * dsz_pad * itemsize
    table_limit = (24 << 20) if big_vmem else (16 << 20)
    small_table = (vsz <= 4096) and (table_bytes <= table_limit)

    if small_table and not force_hbm_gather:
        tb_req = token_block if token_block is not None else (
            512 if big_vmem else (128 if dsz_pad >= 512 else 256))
        tb = _round_up(min(tb_req, _round_up(n_tok, _SUBLANE)), _SUBLANE)
        out_flat = _lookup_resident(flat_ids, weights, tb, device_vmem)
    else:
        tb_req = token_block if token_block is not None else 256
        tb = _round_up(min(tb_req, _round_up(n_tok, _SUBLANE)), _SUBLANE)
        out_flat = _lookup_hbm_gather(flat_ids, weights, tb)
    return out_flat.reshape(B, T, dsz)


if __name__ == "__main__":
    key = jax.random.PRNGKey(0)
    k_w, k_x = jax.random.split(key)

    vsz, dsz = 32, 32   # small vocab / hidden consistent with the module
    B, T = 2, 8

    # Deterministic parameter init; zero the padding row like nn.Embedding
    # with padding_idx does.
    weights = jax.random.normal(k_w, (vsz, dsz), dtype=jnp.float32)
    weights = weights.at[PAD_IDX].set(0.0)

    x = jax.random.randint(k_x, (B, T), minval=0, maxval=vsz, dtype=jnp.int32)

    # Pure-JAX reference (torch.nn.Embedding lookup).
    ref = jnp.take(weights, x, axis=0)

    # Primary path: VMEM-resident table + K-tiled one-hot MXU gather.
    out = lookup_table_embeddings(x, weights)
    out = jax.block_until_ready(out)
    assert out.shape == (B, T, dsz)
    assert jnp.allclose(out, ref, atol=1e-6), "resident-table path mismatch vs reference"

    # Large-table fallback path: chunked, double-buffered HBM row-DMA gather
    # writing straight into the output block.
    out_hbm = lookup_table_embeddings(x, weights, force_hbm_gather=True)
    out_hbm = jax.block_until_ready(out_hbm)
    assert jnp.allclose(out_hbm, ref), "hbm-gather path mismatch vs reference"

    print("KERNEL_OK")
</pallas_src>

<mosaic_0001>
module attributes {stable_mosaic.version = 11 : i64} {
  func.func @_embed_onehot_kernel(%arg0: i32, %arg1: memref<16x1xi32, #tpu.memory_space<vmem>>, %arg2: memref<256x128xf32, #tpu.memory_space<vmem>>, %arg3: memref<16x128xf32, #tpu.memory_space<vmem>>) attributes {dimension_semantics = [#tpu.dimension_semantics<parallel>], iteration_bounds = array<i64: 1>, scalar_prefetch = 0 : i64, scratch_operands = 0 : i64, tpu.core_type = #tpu.core_type<tc>, window_params = [{transform_indices = @transform_0, window_bounds = array<i64: 16, 1>}, {pipeline_mode = #tpu.pipeline_mode<synchronous>, transform_indices = @transform_1, window_bounds = array<i64: 256, 128>}, {transform_indices = @transform_2, window_bounds = array<i64: 16, 128>}]} {
    %c0 = arith.constant 0 : index
    %c0_0 = arith.constant 0 : index
    %0 = vector.load %arg1[%c0, %c0_0] : memref<16x1xi32, #tpu.memory_space<vmem>>, vector<16x1xi32>
    %cst = arith.constant 0.000000e+00 : f32
    %1 = vector.broadcast %cst : f32 to vector<16x128xf32>
    %2 = tpu.iota {dimensions = array<i32: 1>} : vector<16x256xi32>
    %c0_i32 = arith.constant 0 : i32
    %3 = vector.broadcast %c0_i32 : i32 to vector<16x256xi32>
    %4 = arith.addi %2, %3 : vector<16x256xi32>
    %5 = vector.broadcast %0 : vector<16x1xi32> to vector<16x256xi32>
    %6 = arith.cmpi eq, %5, %4 : vector<16x256xi32>
    %7 = arith.extui %6 : vector<16x256xi1> to vector<16x256xi32>
    %8 = arith.sitofp %7 : vector<16x256xi32> to vector<16x256xf32>
    %c0_1 = arith.constant 0 : index
    %c0_2 = arith.constant 0 : index
    %9 = vector.load %arg2[%c0_1, %c0_2] : memref<256x128xf32, #tpu.memory_space<vmem>>, vector<256x128xf32>
    %cst_3 = arith.constant dense<0.000000e+00> : vector<16x128xf32>
    %10 = tpu.matmul %8, %9, %cst_3 {dimension_numbers = #tpu.dot_dimension_numbers<[1], [0], [0], [1], [0, 0, 1, 1], [], []>, precision = #tpu.contract_precision<fp32>} : vector<16x256xf32>, vector<256x128xf32>, vector<16x128xf32> -> vector<16x128xf32>
    %11 = arith.addf %1, %10 : vector<16x128xf32>
    %c0_4 = arith.constant 0 : index
    %c0_5 = arith.constant 0 : index
    %12 = vector.load %arg3[%c0_4, %c0_5] : memref<16x128xf32, #tpu.memory_space<vmem>>, vector<16x128xf32>
    tpu.vector_store %arg3[%c0_4, %c0_5], %11 {strides = array<i32>} : memref<16x128xf32, #tpu.memory_space<vmem>>, vector<16x128xf32>,
    return
  }
  func.func @transform_0(%arg0: i32) -> (i32, i32) {
    %c0_i32 = arith.constant 0 : i32
    %c0_i32_0 = arith.constant 0 : i32
    return %arg0, %c0_i32 : i32, i32
  }
  func.func @transform_1(%arg0: i32) -> (i32, i32) {
    %c0_i32 = arith.constant 0 : i32
    %c0_i32_0 = arith.constant 0 : i32
    %c0_i32_1 = arith.constant 0 : i32
    return %c0_i32, %c0_i32_0 : i32, i32
  }
  func.func @transform_2(%arg0: i32) -> (i32, i32) {
    %c0_i32 = arith.constant 0 : i32
    %c0_i32_0 = arith.constant 0 : i32
    return %arg0, %c0_i32 : i32, i32
  }
}

</mosaic_0001>

<bundles_post_ra>
// kernel: tpu_custom_call.1
= control target key start
LH: loop header
LB: loop body
LE: loop exit
PB: predicated region body
PF: predicated region fallthrough
CT: control target
= control target key end

     0   :  { %7 = vsyncpa [#allocation3], 0  ;;  %s2291_s0 = inlined_call_operand.vmem [shape: s32[16,1], index: 0, kind: input, shape index: {}]   ;;  %s2292_s1 = inlined_call_operand.hbm [shape: f32[256,128], index: 1, kind: input, shape index: {}]   ;;  %s2293_s2 = inlined_call_operand.hbm [shape: f32[16,128], index: 2, kind: output, shape index: {}]  }
   0x1   :  { %8 = vsyncpa [#allocation4], 0  ;;  %s1510_s9 = smov [#allocation2]   ;;  %s1462_s13 = scalar_lea.hbm %s2292_s1, 4096 }
   0x2   :  { %s16_s10 = sshll.u32 %s1510_s9, 4  ;;  %p1463_p0 = scmp.ne.s32.totalorder %s2292_s1, %s1462_s13  ;;  %s17_s10 = int_to_ptr.vmem [resolvable:$true] %s16_s10 }
   0x3   :  { %p1466_p1 = scmp.lt.u32.totalorder %s1462_s13, %s2292_s1 }
   0x5   :  { %p1468_p2 = pnand %p1466_p1, %p1463_p0 }
   0x7   :  { %1471 = shalt.err (!%p1468_p2)
}
   0x8   :  { %s1472_s18 = scalar_lea.vmem %s17_s10, 4096  ;;  %p1477_p4 = scmp.lt.s32.totalorder %s17_s10, %s17_s10 }
   0x9   :  { %p1473_p3 = scmp.ne.s32.totalorder %s17_s10, %s1472_s18  ;;  %p1478_p5 = scmp.lt.s32.totalorder %s1472_s18, %s1472_s18 }
   0xb   :  { %p1479_p6 = por %p1478_p5, %p1477_p4 }
   0xd   :  { %p1480_p7 = pnand %p1479_p6, %p1473_p3 }
   0xf   :  { %1483 = shalt.err (!%p1480_p7)
}
  0x10   :  { %s1511_s19 = smov 128   ;;  %s1512_s20 = smov 8  }
  0x11   :  { %22 = dma.hbm_to_vmem [thread:$0]  %s2292_s1, 4096, %s17_s10, [#allocation3], %s1511_s19, %s1511_s19, %s1512_s20  }
  0x12   :  { %1506 = dma.done.wait [#allocation3], 4096  }
  0x13   :  { %1507 = vsyncadd [#allocation3], 4294963200  ;;  %v1513_v0 = vmov 0   ;;  %v26_v1 = vld [vmem:[%s2291_s0] sm:$0xff]  ;;  %v27_v2 = vld [vmem:[%s2291_s0 + $0x8] sm:$0xff]  ;;  %s1516_s0 = smov [#allocation5]  }
  0x14   :  { %1461 = vset.pattern.permute.xlu0 %v1513_v0  ;;  %v1553_v3 = vld [vmem:[#allocation2 + $0x80] sm:$0xff]  ;;  %v66_v4 = vld [vmem:[#allocation2 + $0x88] sm:$0xff]  ;;  %v1562_v11 = vld [vmem:[#allocation2 + $0x90] sm:$0xff]  ;;  %s1006_s1 = sshll.u32 %s1516_s0, 4  ;;  %s1007_s1 = int_to_ptr.vmem [resolvable:$true] %s1006_s1 }
  0x15   :  { %32 = vperm.xlu0 %1461, %v26_v1   ;;  %v130_v5 = vand.u32 4294901760, %v1553_v3  ;;  %v1556_v6 = vld [vmem:[#allocation2] sm:$0xff]  ;;  %v1558_v7 = vld [vmem:[#allocation2 + $0x8] sm:$0xff]  ;;  %v133_v8 = vand.u32 4294901760, %v66_v4  ;;  %v1564_v12 = vld [vmem:[#allocation2 + $0x98] sm:$0xff]  ;;  %v136_v15 = vand.u32 4294901760, %v1562_v11  ;;  %p1489_p9 = scmp.lt.s32.totalorder %s1007_s1, %s1007_s1 }
  0x16   :  { %v82_v9 = vand.u32 4294901760, %v1556_v6  ;;  %v85_v10 = vand.u32 4294901760, %v1558_v7  ;;  %v1566_v13 = vld [vmem:[#allocation2 + $0x10] sm:$0xff]  ;;  %v139_v16 = vand.u32 4294901760, %v1564_v12  ;;  %v1573_v17 = vld [vmem:[#allocation2 + $0x18] sm:$0xff]  ;;  %v1625_v39 = vld [vmem:[#allocation2 + $0xa0] sm:$0xff] }
  0x17   :  { %v1569_v14 = vsub.f32 %v1553_v3, %v130_v5  ;;  %v88_v18 = vand.u32 4294901760, %v1566_v13  ;;  %v1576_v19 = vsub.f32 %v66_v4, %v133_v8  ;;  %v91_v22 = vand.u32 4294901760, %v1573_v17  ;;  %v1636_v44 = vld [vmem:[#allocation2 + $0xa8] sm:$0xff]  ;;  %v1641_v49 = vld [vmem:[#allocation2 + $0x20] sm:$0xff]  ;;  %v1647_v59 = vld [vmem:[#allocation2 + $0xb0] sm:$0xff]  ;;  %s1484_s27 = scalar_lea.vmem %s1007_s1, 256 }
  0x18   :  { %v1579_v20 = vsub.f32 %v1556_v6, %v82_v9  ;;  %v1582_v21 = vsub.f32 %v1558_v7, %v85_v10  ;;  %v1589_v24 = vsub.f32 %v1562_v11, %v136_v15  ;;  %v1594_v25 = vsub.f32 %v1564_v12, %v139_v16  ;;  %v1644_v54 = vld [vmem:[#allocation2 + $0x28] sm:$0xff]  ;;  %v1649_v60 = vld [vmem:[#allocation2 + $0xb8] sm:$0xff]  ;;  %v1659_v1 = vld [vmem:[#allocation2 + $0x30] sm:$0xff]  ;;  %p1485_p8 = scmp.ne.s32.totalorder %s1007_s1, %s1484_s27  ;;  %p1490_p10 = scmp.lt.s32.totalorder %s1484_s27, %s1484_s27 }
  0x19   :  { %35 = vperm.xlu0 %1461, %v27_v2   ;;  %v2314_v23 = vand.u32 4294901760, %v1569_v14  ;;  %v1599_v26 = vsub.f32 %v1566_v13, %v88_v18  ;;  %v2313_v27 = vand.u32 4294901760, %v1576_v19  ;;  %v1607_v30 = vsub.f32 %v1573_v17, %v91_v22 }
  0x1a   :  { %v2310_v28 = vand.u32 4294901760, %v1579_v20  ;;  %v2308_v29 = vand.u32 4294901760, %v1582_v21  ;;  %v2307_v32 = vand.u32 4294901760, %v1589_v24  ;;  %v2306_v33 = vand.u32 4294901760, %v1594_v25  ;;  %p1491_p11 = por %p1490_p10, %p1489_p9 }
  0x1b   :  { %v324_v31 = vsub.f32 %v1569_v14, %v2314_v23  ;;  %v2305_v34 = vand.u32 4294901760, %v1599_v26  ;;  %v331_v35 = vsub.f32 %v1576_v19, %v2313_v27  ;;  %v2299_v38 = vand.u32 4294901760, %v1607_v30  ;;  %v1872_v23 = vld [vmem:[#allocation2 + $0x60] sm:$0xff] }
  0x1c   :  { %v212_v36 = vsub.f32 %v1579_v20, %v2310_v28  ;;  %v219_v37 = vsub.f32 %v1582_v21, %v2308_v29  ;;  %v338_v41 = vsub.f32 %v1589_v24, %v2307_v32  ;;  %v345_v42 = vsub.f32 %v1594_v25, %v2306_v33  ;;  %p1492_p12 = pnand %p1491_p11, %p1485_p8 }
  0x1d   :  { %v325_v40 = vand.u32 4294901760, %v324_v31  ;;  %v226_v43 = vsub.f32 %v1599_v26, %v2305_v34  ;;  %v332_v45 = vand.u32 4294901760, %v331_v35  ;;  %v233_v48 = vsub.f32 %v1607_v30, %v2299_v38  ;;  %v1678_v35 = vld [vmem:[#allocation2 + $0x38] sm:$0xff] }
  0x1e   :  { %v213_v46 = vand.u32 4294901760, %v212_v36  ;;  %v220_v47 = vand.u32 4294901760, %v219_v37  ;;  %v339_v50 = vand.u32 4294901760, %v338_v41  ;;  %v346_v51 = vand.u32 4294901760, %v345_v42 }
  0x1f   :  { %v227_v52 = vand.u32 4294901760, %v226_v43  ;;  %v142_v53 = vand.u32 4294901760, %v1625_v39  ;;  %v1294_v55 = vpack.c.bf16 %v332_v45, %v325_v40  ;;  %v234_v57 = vand.u32 4294901760, %v233_v48 }
  0x20   :  { %v1296_v56 = vpack.c.bf16 %v220_v47, %v213_v46  ;;  %v145_v58 = vand.u32 4294901760, %v1636_v44  ;;  %v1298_v61 = vpack.c.bf16 %v346_v51, %v339_v50  ;;  %v1656_v63 = vpack.c.bf16 %v133_v8, %v130_v5 }
  0x21   :  { %v1654_v62 = vsub.f32 %v1625_v39, %v142_v53  ;;  %v94_v0 = vand.u32 4294901760, %v1641_v49  ;;  %1295 = vmatprep.subr.bf16.mxu1 %v1294_v55  ;;  %v1300_v2 = vpack.c.bf16 %v234_v57, %v227_v52  ;;  %v97_v4 = vand.u32 4294901760, %v1644_v54  ;;  %v1735_v57 = vld [vmem:[#allocation2 + $0xc8] sm:$0xff] }
  0x22   :  { %v1664_v3 = vsub.f32 %v1636_v44, %v145_v58  ;;  %v1667_v6 = vpack.c.bf16 %v85_v10, %v82_v9  ;;  %1297 = vmatpush3.bf16.msra.mxu1 %v1296_v56  ;;  %1263 = vmatprep.subr.bf16.mxu0 %v1656_v63  ;;  %v148_v8 = vand.u32 4294901760, %v1647_v59  ;;  %v151_v31 = vand.u32 4294901760, %v1649_v60  ;;  %v1733_v56 = vld [vmem:[#allocation2 + $0xc0] sm:$0xff] }
  0x23   :  { %v2297_v7 = vand.u32 4294901760, %v1654_v62  ;;  %v1674_v5 = vsub.f32 %v1641_v49, %v94_v0  ;;  %1299 = vmatprep.subr.bf16.mxu1 %v1298_v61  ;;  %v1684_v10 = vsub.f32 %v1644_v54, %v97_v4  ;;  %v1691_v36 = vpack.c.bf16 %v139_v16, %v136_v15  ;;  %v1803_v49 = vld [vmem:[#allocation2 + $0x58] sm:$0xff] }
  0x24   :  { %v2296_v9 = vand.u32 4294901760, %v1664_v3  ;;  %1265 = vmatpush3.bf16.msra.mxu0 %v1667_v6  ;;  %v100_v37 = vand.u32 4294901760, %v1659_v1  ;;  %v1701_v42 = vsub.f32 %v1647_v59, %v148_v8  ;;  %v1706_v11 = vsub.f32 %v1649_v60, %v151_v31 }
  0x25   :  { %v352_v40 = vsub.f32 %v1654_v62, %v2297_v7  ;;  %v2295_v41 = vand.u32 4294901760, %v1674_v5  ;;  %v2294_v15 = vand.u32 4294901760, %v1684_v10  ;;  %1267 = vmatprep.subr.bf16.mxu0 %v1691_v36  ;;  %v103_v16 = vand.u32 4294901760, %v1678_v35  ;;  %v1753_v7 = vld [vmem:[#allocation2 + $0x40] sm:$0xff] }
  0x26   :  { %v359_v12 = vsub.f32 %v1664_v3, %v2296_v9  ;;  %v1717_v43 = vsub.f32 %v1659_v1, %v100_v37  ;;  %1301 = vmatpush3.bf16.msra.mxu1 %v1300_v2  ;;  %v2298_v47 = vand.u32 4294901760, %v1701_v42  ;;  %v2301_v48 = vand.u32 4294901760, %v1706_v11 }
  0x27   :  { %v353_v45 = vand.u32 4294901760, %v352_v40  ;;  %v240_v46 = vsub.f32 %v1674_v5, %v2295_v41  ;;  %v247_v51 = vsub.f32 %v1684_v10, %v2294_v15  ;;  %v1731_v55 = vsub.f32 %v1678_v35, %v103_v16 }
  0x28   :  { %v360_v50 = vand.u32 4294901760, %v359_v12  ;;  %v2300_v52 = vand.u32 4294901760, %v1717_v43  ;;  %v366_v2 = vsub.f32 %v1701_v42, %v2298_v47  ;;  %v373_v40 = vsub.f32 %v1706_v11, %v2301_v48 }
  0x29   :  { %v241_v61 = vand.u32 4294901760, %v240_v46  ;;  %v1747_v12 = vpack.c.bf16 %v91_v22, %v88_v18  ;;  %v248_v41 = vand.u32 4294901760, %v247_v51  ;;  %v2302_v9 = vand.u32 4294901760, %v1731_v55  ;;  %v1758_v18 = vld [vmem:[#allocation2 + $0x48] sm:$0xff]  ;;  %v1760_v22 = vld [vmem:[#allocation2 + $0xd0] sm:$0xff] }
  0x2a   :  { %v1302_v15 = vpack.c.bf16 %v360_v50, %v353_v45  ;;  %v254_v46 = vsub.f32 %v1717_v43, %v2300_v52  ;;  %v367_v47 = vand.u32 4294901760, %v366_v2  ;;  %v374_v38 = vand.u32 4294901760, %v373_v40  ;;  %v1771_v40 = vld [vmem:[#allocation2 + $0xd8] sm:$0xff] }
  0x2b   :  { %1269 = vmatpush3.bf16.msra.mxu0 %v1747_v12  ;;  %v154_v13 = vand.u32 4294901760, %v1733_v56  ;;  %v157_v17 = vand.u32 4294901760, %v1735_v57  ;;  %v1304_v45 = vpack.c.bf16 %v248_v41, %v241_v61  ;;  %v261_v51 = vsub.f32 %v1731_v55, %v2302_v9 }
  0x2c   :  { %1303 = vmatprep.subr.bf16.mxu1 %v1302_v15  ;;  %v255_v50 = vand.u32 4294901760, %v254_v46  ;;  %v1769_v2 = vpack.c.bf16 %v145_v58, %v142_v53  ;;  %v1306_v52 = vpack.c.bf16 %v374_v38, %v367_v47  ;;  %v106_v15 = vand.u32 4294901760, %v1753_v7 }
  0x2d   :  { %v1776_v48 = vsub.f32 %v1733_v56, %v154_v13  ;;  %v1781_v41 = vsub.f32 %v1735_v57, %v157_v17  ;;  %1305 = vmatpush3.bf16.msra.mxu1 %v1304_v45  ;;  %v262_v39 = vand.u32 4294901760, %v261_v51  ;;  %v109_v44 = vand.u32 4294901760, %v1758_v18  ;;  %v1801_v45 = vld [vmem:[#allocation2 + $0x50] sm:$0xff] }
  0x2e   :  { %1271 = vmatprep.subr.bf16.mxu0 %v1769_v2  ;;  %v1790_v38 = vpack.c.bf16 %v97_v4, %v94_v0  ;;  %v2318_v53 = vand.u32 4294901760, %v1760_v22  ;;  %1307 = vmatprep.subr.bf16.mxu1 %v1306_v52  ;;  %v1798_v61 = vsub.f32 %v1753_v7, %v106_v15  ;;  %v2317_v46 = vand.u32 4294901760, %v1771_v40 }
  0x2f   :  { %v2303_v58 = vand.u32 4294901760, %v1776_v48  ;;  %v2304_v47 = vand.u32 4294901760, %v1781_v41  ;;  %v1308_v54 = vpack.c.bf16 %v262_v39, %v255_v50  ;;  %v1808_v0 = vsub.f32 %v1758_v18, %v109_v44 }
  0x30   :  { %1273 = vmatpush3.bf16.msra.mxu0 %v1790_v38  ;;  %v1814_v4 = vsub.f32 %v1760_v22, %v2318_v53  ;;  %v1820_v52 = vpack.c.bf16 %v151_v31, %v148_v8  ;;  %v2309_v39 = vand.u32 4294901760, %v1798_v61  ;;  %v1832_v9 = vsub.f32 %v1771_v40, %v2317_v46 }
  0x31   :  { %v380_v50 = vsub.f32 %v1776_v48, %v2303_v58  ;;  %v387_v51 = vsub.f32 %v1781_v41, %v2304_v47  ;;  %1309 = vmatpush3.bf16.msra.mxu1 %v1308_v54  ;;  %v2311_v59 = vand.u32 4294901760, %v1808_v0  ;;  %v2316_v8 = vand.u32 4294901760, %v1801_v45 }
  0x32   :  { %v2312_v60 = vand.u32 4294901760, %v1814_v4  ;;  %1275 = vmatprep.subr.bf16.mxu0 %v1820_v52  ;;  %v2315_v31 = vand.u32 4294901760, %v1803_v49  ;;  %v268_v34 = vsub.f32 %v1798_v61, %v2309_v39  ;;  %v2319_v33 = vand.u32 4294901760, %v1832_v9  ;;  %v1861_v39 = vld [vmem:[#allocation2 + $0xe8] sm:$0xff] }
  0x33   :  { %v381_v58 = vand.u32 4294901760, %v380_v50  ;;  %v388_v47 = vand.u32 4294901760, %v387_v51  ;;  %v275_v54 = vsub.f32 %v1808_v0, %v2311_v59  ;;  %v1852_v29 = vsub.f32 %v1801_v45, %v2316_v8  ;;  %v1859_v51 = vld [vmem:[#allocation2 + $0xe0] sm:$0xff] }
  0x34   :  { %v394_v32 = vsub.f32 %v1814_v4, %v2312_v60  ;;  %v1857_v50 = vsub.f32 %v1803_v49, %v2315_v31  ;;  %v269_v59 = vand.u32 4294901760, %v268_v34  ;;  %v401_v60 = vsub.f32 %v1832_v9, %v2319_v33 }
  0x35   :  { %v1310_v28 = vpack.c.bf16 %v388_v47, %v381_v58  ;;  %v1870_v27 = vpack.c.bf16 %v103_v16, %v100_v37  ;;  %v276_v31 = vand.u32 4294901760, %v275_v54  ;;  %v2322_v46 = vand.u32 4294901760, %v1852_v29  ;;  %v1876_v58 = vld [vmem:[#allocation2 + $0x68] sm:$0xff] }
  0x36   :  { %v395_v8 = vand.u32 4294901760, %v394_v32  ;;  %v2320_v53 = vand.u32 4294901760, %v1857_v50  ;;  %v402_v34 = vand.u32 4294901760, %v401_v60  ;;  %v166_v1 = vand.u32 4294901760, %v1859_v51  ;;  %v79_v60 = vld [vmem:[#allocation2 + $0xf0] sm:$0xff] }
  0x37   :  { %2342 = vst [vmem:[#allocation8_spill] sm:$0xff] %v1870_v27  ;;  %1311 = vmatprep.subr.bf16.mxu1 %v1310_v28  ;;  %1277 = vmatpush3.bf16.msra.mxu0 %v1870_v27  ;;  %v169_v35 = vand.u32 4294901760, %v1861_v39  ;;  %v1885_v37 = vpack.c.bf16 %v157_v17, %v154_v13  ;;  %v1312_v32 = vpack.c.bf16 %v276_v31, %v269_v59  ;;  %v118_v47 = vand.u32 4294901760, %v1872_v23  ;;  %v80_v13 = vld [vmem:[#allocation2 + $0xf8] sm:$0xff] }
  0x38   :  { %v282_v16 = vsub.f32 %v1852_v29, %v2322_v46  ;;  %v289_v28 = vsub.f32 %v1857_v50, %v2320_v53  ;;  %v1314_v54 = vpack.c.bf16 %v402_v34, %v395_v8  ;;  %v1895_v33 = vsub.f32 %v1859_v51, %v166_v1 }
  0x39   :  { %2343 = vst [vmem:[#allocation9_spill] sm:$0xff] %v1885_v37  ;;  %v1898_v56 = vsub.f32 %v1861_v39, %v169_v35  ;;  %1279 = vmatprep.subr.bf16.mxu0 %v1885_v37  ;;  %v121_v57 = vand.u32 4294901760, %v1876_v58  ;;  %1313 = vmatpush3.bf16.msra.mxu1 %v1312_v32  ;;  %v1903_v31 = vsub.f32 %v1872_v23, %v118_v47  ;;  %v172_v32 = vand.u32 4294901760, %v79_v60 }
  0x3a   :  { %v283_v17 = vand.u32 4294901760, %v282_v16  ;;  %v290_v59 = vand.u32 4294901760, %v289_v28  ;;  %v1909_v8 = vpack.c.bf16 %v109_v44, %v106_v15  ;;  %1315 = vmatprep.subr.bf16.mxu1 %v1314_v54  ;;  %v2321_v39 = vand.u32 4294901760, %v1895_v33  ;;  %v63_v16 = vld [vmem:[#allocation2 + $0x70] sm:$0xff]  ;;  %v64_v28 = vld [vmem:[#allocation2 + $0x78] sm:$0xff] }
  0x3b   :  { %v2323_v51 = vand.u32 4294901760, %v1898_v56  ;;  %v1914_v34 = vsub.f32 %v1876_v58, %v121_v57  ;;  %v2328_v23 = vand.u32 4294901760, %v1903_v31  ;;  %v175_v7 = vand.u32 4294901760, %v80_v13 }
  0x3c   :  { %2344 = vst [vmem:[#allocation10_spill] sm:$0xff] %v1909_v8  ;;  %v1316_v53 = vpack.c.bf16 %v290_v59, %v283_v17  ;;  %1281 = vmatpush3.bf16.msra.mxu0 %v1909_v8  ;;  %v2345_v18 = vand.u32 4294901760, %v1760_v22  ;;  %v2346_v15 = vand.u32 4294901760, %v1771_v40  ;;  %v408_v58 = vsub.f32 %v1895_v33, %v2321_v39 }
  0x3d   :  { %v415_v54 = vsub.f32 %v1898_v56, %v2323_v51  ;;  %v2333_v17 = vand.u32 4294901760, %v1914_v34  ;;  %v1931_v59 = vsub.f32 %v79_v60, %v172_v32  ;;  %v296_v22 = vsub.f32 %v1903_v31, %v2328_v23 }
  0x3e   :  { %v1922_v44 = vpack.c.bf16 %v2346_v15, %v2345_v18  ;;  %1317 = vmatpush3.bf16.msra.mxu1 %v1316_v53  ;;  %v1936_v40 = vsub.f32 %v80_v13, %v175_v7  ;;  %v124_v18 = vand.u32 4294901760, %v63_v16  ;;  %v127_v15 = vand.u32 4294901760, %v64_v28 }
  0x3f   :  { %v409_v39 = vand.u32 4294901760, %v408_v58  ;;  %v416_v46 = vand.u32 4294901760, %v415_v54  ;;  %v303_v51 = vsub.f32 %v1914_v34, %v2333_v17  ;;  %v2335_v60 = vand.u32 4294901760, %v1931_v59 }
  0x40   :  { %2347 = vst [vmem:[#allocation11_spill] sm:$0xff] %v1922_v44  ;;  %1283 = vmatprep.subr.bf16.mxu0 %v1922_v44  ;;  %v297_v8 = vand.u32 4294901760, %v296_v22  ;;  %v2334_v53 = vand.u32 4294901760, %v1936_v40  ;;  %v1944_v37 = vsub.f32 %v63_v16, %v124_v18  ;;  %v1946_v23 = vsub.f32 %v64_v28, %v127_v15 }
  0x41   :  { %v1318_v13 = vpack.c.bf16 %v416_v46, %v409_v39  ;;  %v304_v27 = vand.u32 4294901760, %v303_v51  ;;  %v422_v58 = vsub.f32 %v1931_v59, %v2335_v60  ;;  %v2348_v54 = vand.u32 4294901760, %v1801_v45 }
  0x42   :  { %v2349_v44 = vand.u32 4294901760, %v1803_v49  ;;  %v429_v22 = vsub.f32 %v1936_v40, %v2334_v53  ;;  %v309_v16 = vand.u32 4294901760, %v1944_v37  ;;  %v316_v28 = vand.u32 4294901760, %v1946_v23 }
  0x43   :  { %v1962_v46 = vpack.c.bf16 %v169_v35, %v166_v1  ;;  %1319 = vmatprep.subr.bf16.mxu1 %v1318_v13  ;;  %v1320_v39 = vpack.c.bf16 %v304_v27, %v297_v8  ;;  %v423_v51 = vand.u32 4294901760, %v422_v58  ;;  %v1965_v45 = vpack.c.bf16 %v121_v57, %v118_v47 }
  0x44   :  { %v1955_v17 = vpack.c.bf16 %v2349_v44, %v2348_v54  ;;  %v1967_v49 = vpack.c.bf16 %v175_v7, %v172_v32  ;;  %v430_v44 = vand.u32 4294901760, %v429_v22  ;;  %v310_v54 = vsub.f32 %v1944_v37, %v309_v16 }
  0x45   :  { %v317_v53 = vsub.f32 %v1946_v23, %v316_v28  ;;  %v1972_v60 = vpack.c.bf16 %v127_v15, %v124_v18  ;;  %1321 = vmatpush3.bf16.msra.mxu1 %v1320_v39  ;;  %v1326_v27 = vpack.c.bf16 %v1576_v19, %v1569_v14  ;;  %v2351_v39 = vand.u32 4294901760, %v1576_v19 }
  0x46   :  { %1285 = vmatpush3.bf16.msra.mxu0 %v1955_v17  ;;  %v1322_v57 = vpack.c.bf16 %v430_v44, %v423_v51  ;;  %v311_v8 = vand.u32 4294901760, %v310_v54  ;;  %v2352_v51 = vand.u32 4294901760, %v1579_v20  ;;  %v2353_v44 = vand.u32 4294901760, %v1582_v21 }
  0x47   :  { %1287 = vmatprep.subr.bf16.mxu0 %v1962_v46  ;;  %v318_v32 = vand.u32 4294901760, %v317_v53  ;;  %v2354_v54 = vand.u32 4294901760, %v1589_v24  ;;  %v2357_v19 = vand.u32 4294901760, %v1607_v30  ;;  %v2365_v13 = vand.u32 4294901760, %v1701_v42 }
  0x48   :  { %1323 = vmatprep.subr.bf16.mxu1 %v1322_v57  ;;  %v2018_v58 = vpack.c.bf16 %v2353_v44, %v2352_v51  ;;  %v2355_v57 = vand.u32 4294901760, %v1594_v25  ;;  %v2360_v51 = vand.u32 4294901760, %v1664_v3  ;;  %v2366_v15 = vand.u32 4294901760, %v1706_v11 }
  0x49   :  { %v1324_v22 = vpack.c.bf16 %v318_v32, %v311_v8  ;;  %v2350_v32 = vand.u32 4294901760, %v1569_v14  ;;  %v2356_v14 = vand.u32 4294901760, %v1599_v26  ;;  %v2362_v8 = vand.u32 4294901760, %v1674_v5 }
  0x4a   :  { %1289 = vmatpush3.bf16.msra.mxu0 %v1965_v45  ;;  %v2050_v18 = vpack.c.bf16 %v2366_v15, %v2365_v13  ;;  %v2377_v15 = vand.u32 4294901760, %v1814_v4  ;;  %v2378_v13 = vand.u32 4294901760, %v1832_v9 }
  0x4b   :  { %1291 = vmatprep.subr.bf16.mxu0 %v1967_v49  ;;  %1325 = vmatpush3.bf16.msra.mxu1 %v1324_v22  ;;  %v2012_v53 = vpack.c.bf16 %v2351_v39, %v2350_v32  ;;  %v2024_v22 = vpack.c.bf16 %v2355_v57, %v2354_v54  ;;  %v2032_v39 = vpack.c.bf16 %v2357_v19, %v2356_v14  ;;  %v2359_v32 = vand.u32 4294901760, %v1654_v62 }
  0x4c   :  { %1359 = vmatprep.subr.bf16.mxu1 %v1656_v63  ;;  %v2363_v54 = vand.u32 4294901760, %v1684_v10  ;;  %2367 = vst [vmem:[#allocation15_spill] sm:$0xff] %v2050_v18  ;;  %v2368_v14 = vand.u32 4294901760, %v1717_v43  ;;  %v2369_v19 = vand.u32 4294901760, %v1731_v55  ;;  %v2074_v35 = vpack.c.bf16 %v2378_v13, %v2377_v15 }
  0x4d   :  { %2358 = vst [vmem:[#allocation12_spill] sm:$0xff] %v2032_v39  ;;  %v2038_v44 = vpack.c.bf16 %v2360_v51, %v2359_v32  ;;  %v2371_v32 = vand.u32 4294901760, %v1776_v48  ;;  %v2372_v51 = vand.u32 4294901760, %v1781_v41  ;;  %v2389_v15 = vand.u32 4294901760, %v1931_v59 }
  0x4e   :  { %1293 = vmatpush3.bf16.msra.mxu0 %v1972_v60  ;;  %v2044_v57 = vpack.c.bf16 %v2363_v54, %v2362_v8  ;;  %v2056_v7 = vpack.c.bf16 %v2369_v19, %v2368_v14  ;;  %v2375_v8 = vand.u32 4294901760, %v1808_v0  ;;  %2379 = vst [vmem:[#allocation19_spill] sm:$0xff] %v2074_v35  ;;  %v2380_v14 = vand.u32 4294901760, %v1852_v29 }
  0x4f   :  { %2361 = vst [vmem:[#allocation13_spill] sm:$0xff] %v2038_v44  ;;  %1327 = vmatprep.subr.bf16.mxu0 %v1326_v27  ;;  %v2062_v47 = vpack.c.bf16 %v2372_v51, %v2371_v32  ;;  %v2374_v27 = vand.u32 4294901760, %v1798_v61  ;;  %v2381_v19 = vand.u32 4294901760, %v1857_v50  ;;  %v2383_v32 = vand.u32 4294901760, %v1895_v33 }
  0x50   :  { %2364 = vst [vmem:[#allocation14_spill] sm:$0xff] %v2044_v57  ;;  %2370 = vst [vmem:[#allocation16_spill] sm:$0xff] %v2056_v7  ;;  %v2384_v51 = vand.u32 4294901760, %v1898_v56  ;;  %v2390_v13 = vand.u32 4294901760, %v1936_v40 }
  0x51   :  { %2373 = vst [vmem:[#allocation17_spill] sm:$0xff] %v2062_v47  ;;  %v2068_v54 = vpack.c.bf16 %v2375_v8, %v2374_v27  ;;  %v2080_v1 = vpack.c.bf16 %v2381_v19, %v2380_v14  ;;  %v2386_v27 = vand.u32 4294901760, %v1903_v31  ;;  %v2387_v8 = vand.u32 4294901760, %v1914_v34 }
  0x52   :  { %v2086_v47 = vpack.c.bf16 %v2384_v51, %v2383_v32  ;;  %v2098_v35 = vpack.c.bf16 %v2390_v13, %v2389_v15  ;;  %v2100_v14 = vpack.c.bf16 %v316_v28, %v309_v16  ;;  %v28_v19 = vlaneseq }
  0x53   :  { %2376 = vst [vmem:[#allocation18_spill] sm:$0xff] %v2068_v54  ;;  %2382 = vst [vmem:[#allocation20_spill] sm:$0xff] %v2080_v1  ;;  %v2092_v54 = vpack.c.bf16 %v2387_v8, %v2386_v27  ;;  %v1514_v27 = vmov 0.0   ;;  %v2336_v8 = vmov 1.0  }
  0x54   :  { %2385 = vst [vmem:[#allocation21_spill] sm:$0xff] %v2086_v47  ;;  %2391 = vst [vmem:[#allocation23_spill] sm:$0xff] %v2098_v35  ;;  %v2102_v1 = vand.u32 127, %v28_v19  ;;  %v2395_v35 = vmov 1.0  }
  0x55   :  { %2388 = vst [vmem:[#allocation22_spill] sm:$0xff] %v2092_v54  ;;  %2392 = vst [vmem:[#allocation24_spill] sm:$0xff] %v2100_v14 }
  0x56   :  { %2393 = vst [vmem:[#allocation25_spill] sm:$0xff] %v2102_v1  ;;  %v2105_v32 = vadd.s32 128, %v2102_v1 }
  0x94   :  { %v2107_v51 = vpop.permute.xlu0 %32 }
  0x95   :  { %vm37_vm0 = vcmp.eq.s32.totalorder %v2107_v51, %v2102_v1  ;;  %vm38_vm1 = vcmp.eq.s32.totalorder %v2107_v51, %v2105_v32 }
  0x96   :  { %v1018_v16 = vsel %vm37_vm0, 1.0, %v1514_v27  ;;  %v1019_v28 = vsel %vm38_vm1, 1.0, %v1514_v27  ;;  %1022 = vmatprep.mubr.msk.f32.mxu1 %vm38_vm1, %v2336_v8 }
  0x97   :  { %v178_v15 = vsub.f32 %v1019_v28, %v1019_v28  ;;  %v2123_v13 = vsub.f32 %v1018_v16, %v1018_v16  ;;  %1023 = vmatmul.mubr.msk.f32.vlgmr.msra.gmra.mrb[0].mxu1 %vm37_vm0, %v2336_v8 }
  0x98   :  { %1361 = vmatpush3.bf16.msra.mxu1 %v1667_v6  ;;  %v2130_v19 = vpop.permute.xlu0 %35 }
  0x99   :  { %2394 = vst [vmem:[#allocation26_spill] sm:$0xff] %v2130_v19  ;;  %vm39_vm2 = vcmp.eq.s32.totalorder %v2130_v19, %v2102_v1  ;;  %vm40_vm3 = vcmp.eq.s32.totalorder %v2130_v19, %v2105_v32  ;;  %1363 = vmatprep.subr.bf16.mxu1 %v1691_v36  ;;  %v179_v28 = vand.u32 4294901760, %v178_v15  ;;  %v185_v16 = vand.u32 4294901760, %v2123_v13 }
  0x9a   :  { %v1020_v14 = vsel %vm39_vm2, 1.0, %v1514_v27  ;;  %v1021_v8 = vsel %vm40_vm3, 1.0, %v1514_v27  ;;  %1024 = vmatprep.mubr.msk.f32.mxu1 %vm40_vm3, %v2395_v35  ;;  %v2396_v19 = vpack.c.bf16 %v1582_v21, %v1579_v20  ;;  %v2401_v20 = vpack.c.bf16 %v1664_v3, %v1654_v62  ;;  %v2402_v21 = vld [vmem:[#allocation10_spill] sm:$0xff] }
  0x9b   :  { %v193_v54 = vsub.f32 %v1021_v8, %v1021_v8  ;;  %v199_v47 = vsub.f32 %v1020_v14, %v1020_v14  ;;  %1025 = vmatmul.mubr.msk.f32.gmra.mrb[2].mxu1 %vm39_vm2, %v2395_v35  ;;  %v180_v7 = vsub.f32 %v178_v15, %v179_v28  ;;  %v186_v18 = vsub.f32 %v2123_v13, %v185_v16 }
  0x9c   :  { %1365 = vmatpush3.bf16.msra.mxu1 %v1747_v12  ;;  %693 = vmatprep.mubr.f32.mxu1 %v179_v28  ;;  %v2408_v62 = vpack.c.bf16 %v1808_v0, %v1798_v61  ;;  %v2409_v3 = vpack.c.bf16 %v1832_v9, %v1814_v4  ;;  %v2412_v9 = vpack.c.bf16 %v1914_v34, %v1903_v31  ;;  %v2427_v61 = vld [vmem:[#allocation22_spill] sm:$0xff]  ;;  %v2428_v0 = vld [vmem:[#allocation23_spill] sm:$0xff]  ;;  %v2429_v4 = vld [vmem:[#allocation24_spill] sm:$0xff] }
  0x9d   :  { %1367 = vmatprep.subr.bf16.mxu1 %v1769_v2  ;;  %v181_v27 = vand.u32 4294901760, %v180_v7  ;;  %v187_v57 = vand.u32 4294901760, %v186_v18  ;;  %v194_v44 = vand.u32 4294901760, %v193_v54  ;;  %v200_v39 = vand.u32 4294901760, %v199_v47  ;;  %v2398_v18 = vld [vmem:[#allocation8_spill] sm:$0xff] }
  0x9e   :  { %v2397_v7 = vpack.c.bf16 %v1594_v25, %v1589_v24  ;;  %v2403_v24 = vpack.c.bf16 %v1684_v10, %v1674_v5  ;;  %v2404_v25 = vld [vmem:[#allocation11_spill] sm:$0xff]  ;;  %v2410_v5 = vpack.c.bf16 %v1857_v50, %v1852_v29  ;;  %v2411_v10 = vpack.c.bf16 %v1898_v56, %v1895_v33 }
  0x9f   :  { %182 = vmatprep.mubr.f32.mxu0 %v181_v27  ;;  %v195_v8 = vsub.f32 %v193_v54, %v194_v44  ;;  %v201_v14 = vsub.f32 %v199_v47, %v200_v39  ;;  %v2399_v27 = vpack.c.bf16 %v1607_v30, %v1599_v26  ;;  %v2406_v26 = vpack.c.bf16 %v1731_v55, %v1717_v43  ;;  %v2420_v43 = vld [vmem:[#allocation17_spill] sm:$0xff]  ;;  %v2422_v55 = vld [vmem:[#allocation19_spill] sm:$0xff] }
  0xa0   :  { %1369 = vmatpush3.bf16.msra.mxu1 %v1790_v38  ;;  %188 = vmatmul.mubr.f32.vlgmr.msra.gmra.mrb[0].mxu0 %v187_v57  ;;  %v2400_v57 = vld [vmem:[#allocation9_spill] sm:$0xff]  ;;  %v2407_v30 = vpack.c.bf16 %v1781_v41, %v1776_v48  ;;  %v2413_v29 = vpack.c.bf16 %v1936_v40, %v1931_v59  ;;  %v2414_v33 = vpack.c.bf16 %v1946_v23, %v1944_v37  ;;  %v2421_v48 = vld [vmem:[#allocation18_spill] sm:$0xff] }
  0xa1   :  { %1329 = vmatpush3.bf16.msra.mxu0 %v2396_v19  ;;  %1371 = vmatprep.subr.bf16.mxu1 %v1820_v52  ;;  %v196_v1 = vand.u32 4294901760, %v195_v8  ;;  %v202_v28 = vand.u32 4294901760, %v201_v14 }
  0xa2   :  { %1331 = vmatprep.subr.bf16.mxu0 %v2397_v7 }
  0xa3   :  { %197 = vmatprep.mubr.f32.mxu0 %v196_v1  ;;  %v2405_v1 = vpack.c.bf16 %v1706_v11, %v1701_v42  ;;  %v2418_v42 = vld [vmem:[#allocation15_spill] sm:$0xff]  ;;  %v2419_v11 = vld [vmem:[#allocation16_spill] sm:$0xff] }
  0xa4   :  { %1373 = vmatpush3.bf16.msra.mxu1 %v2398_v18  ;;  %203 = vmatmul.mubr.f32.gmra.mrb[2].mxu0 %v202_v28 }
  0xa5   :  { %1333 = vmatpush3.bf16.msra.mxu0 %v2399_v27  ;;  %577 = vmatprep.mubr.f32.mxu0 %v178_v15 }
  0xa6   :  { %1375 = vmatprep.subr.bf16.mxu1 %v2400_v57  ;;  %1335 = vmatprep.subr.bf16.mxu0 %v2401_v20 }
  0xa8   :  { %1377 = vmatpush3.bf16.msra.mxu1 %v2402_v21 }
  0xa9   :  { %1337 = vmatpush3.bf16.msra.mxu0 %v2403_v24  ;;  %1379 = vmatprep.subr.bf16.mxu1 %v2404_v25 }
  0xaa   :  { %1339 = vmatprep.subr.bf16.mxu0 %v2405_v1 }
  0xac   :  { %1381 = vmatpush3.bf16.msra.mxu1 %v1955_v17 }
  0xad   :  { %1341 = vmatpush3.bf16.msra.mxu0 %v2406_v26  ;;  %1383 = vmatprep.subr.bf16.mxu1 %v1962_v46 }
  0xae   :  { %1343 = vmatprep.subr.bf16.mxu0 %v2407_v30 }
  0xb0   :  { %1385 = vmatpush3.bf16.msra.mxu1 %v1965_v45 }
  0xb1   :  { %1345 = vmatpush3.bf16.msra.mxu0 %v2408_v62  ;;  %1387 = vmatprep.subr.bf16.mxu1 %v1967_v49 }
  0xb2   :  { %1347 = vmatprep.subr.bf16.mxu0 %v2409_v3 }
  0xb4   :  { %1389 = vmatpush3.bf16.msra.mxu1 %v1972_v60 }
  0xb5   :  { %1349 = vmatpush3.bf16.msra.mxu0 %v2410_v5  ;;  %1423 = vmatprep.subr.bf16.mxu1 %v1656_v63  ;;  %v2415_v63 = vld [vmem:[#allocation12_spill] sm:$0xff] }
  0xb6   :  { %1351 = vmatprep.subr.bf16.mxu0 %v2411_v10 }
  0xb7   :  { %697 = vmatmul.mubr.f32.vlgmr.msra.gmra.mrb[4].mxu1 %v185_v16 }
  0xb8   :  { %704 = vmatprep.mubr.f32.mxu1 %v194_v44  ;;  %1425 = vmatpush3.bf16.msra.mxu1 %v1667_v6  ;;  %v2416_v6 = vld [vmem:[#allocation13_spill] sm:$0xff] }
  0xb9   :  { %1353 = vmatpush3.bf16.msra.mxu0 %v2412_v9  ;;  %1427 = vmatprep.subr.bf16.mxu1 %v1691_v36  ;;  %v2417_v36 = vld [vmem:[#allocation14_spill] sm:$0xff] }
  0xba   :  { %1355 = vmatprep.subr.bf16.mxu0 %v2413_v29 }
  0xbb   :  { %708 = vmatmul.mubr.f32.gmra.mrb[6].mxu1 %v200_v39 }
  0xbc   :  { %1429 = vmatpush3.bf16.msra.mxu1 %v1747_v12  ;;  %1030 = vmatprep.mubr.msk.f32.mxu1 %vm38_vm1, %v2395_v35  ;;  %v2423_v12 = vld [vmem:[#allocation20_spill] sm:$0xff] }
  0xbd   :  { %1357 = vmatpush3.bf16.msra.mxu0 %v2414_v33  ;;  %1431 = vmatprep.subr.bf16.mxu1 %v1769_v2  ;;  %v2424_v2 = vld [vmem:[#allocation21_spill] sm:$0xff] }
  0xbe   :  { %1391 = vmatprep.subr.bf16.mxu0 %v2012_v53 }
  0xc0   :  { %580 = vmatmul.mubr.f32.vlgmr.msra.gmra.mrb[4].mxu0 %v2123_v13  ;;  %1433 = vmatpush3.bf16.msra.mxu1 %v1790_v38 }
  0xc1   :  { %586 = vmatprep.mubr.f32.mxu0 %v193_v54  ;;  %1393 = vmatpush3.bf16.msra.mxu0 %v2018_v58 }
  0xc2   :  { %1435 = vmatprep.subr.bf16.mxu1 %v1820_v52  ;;  %1395 = vmatprep.subr.bf16.mxu0 %v2024_v22 }
  0xc4   :  { %589 = vmatmul.mubr.f32.gmra.mrb[6].mxu0 %v199_v47  ;;  %1437 = vmatpush3.bf16.msra.mxu1 %v2398_v18 }
  0xc5   :  { %1397 = vmatpush3.bf16.msra.mxu0 %v2415_v63  ;;  %1026 = vmatprep.mubr.msk.f32.mxu0 %vm38_vm1, %v2395_v35 }
  0xc6   :  { %1439 = vmatprep.subr.bf16.mxu1 %v2400_v57  ;;  %1399 = vmatprep.subr.bf16.mxu0 %v2416_v6 }
  0xc8   :  { %1441 = vmatpush3.bf16.msra.mxu1 %v2402_v21 }
  0xc9   :  { %1401 = vmatpush3.bf16.msra.mxu0 %v2417_v36  ;;  %1443 = vmatprep.subr.bf16.mxu1 %v2404_v25 }
  0xca   :  { %1403 = vmatprep.subr.bf16.mxu0 %v2418_v42 }
  0xcc   :  { %1445 = vmatpush3.bf16.msra.mxu1 %v1955_v17 }
  0xcd   :  { %1405 = vmatpush3.bf16.msra.mxu0 %v2419_v11  ;;  %1447 = vmatprep.subr.bf16.mxu1 %v1962_v46 }
  0xce   :  { %1407 = vmatprep.subr.bf16.mxu0 %v2420_v43 }
  0xd0   :  { %1449 = vmatpush3.bf16.msra.mxu1 %v1965_v45 }
  0xd1   :  { %1409 = vmatpush3.bf16.msra.mxu0 %v2421_v48  ;;  %1451 = vmatprep.subr.bf16.mxu1 %v1967_v49 }
  0xd2   :  { %1411 = vmatprep.subr.bf16.mxu0 %v2422_v55 }
  0xd4   :  { %1453 = vmatpush3.bf16.msra.mxu1 %v1972_v60 }
  0xd5   :  { %1413 = vmatpush3.bf16.msra.mxu0 %v2423_v12 }
  0xd6   :  { %1415 = vmatprep.subr.bf16.mxu0 %v2424_v2 }
  0xd7   :  { %1031 = vmatmul.mubr.msk.f32.vlgmr.msra.gmra.mrb[8].mxu1 %vm37_vm0, %v2395_v35 }
  0xd8   :  { %1032 = vmatprep.mubr.msk.f32.mxu1 %vm40_vm3, %v2395_v35 }
  0xd9   :  { %1417 = vmatpush3.bf16.msra.mxu0 %v2427_v61 }
  0xda   :  { %1419 = vmatprep.subr.bf16.mxu0 %v2428_v0 }
  0xdb   :  { %1033 = vmatmul.mubr.msk.f32.gmra.mrb[10].mxu1 %vm39_vm2, %v2395_v35 }
  0xdd   :  { %1421 = vmatpush3.bf16.msra.mxu0 %v2429_v4 }
  0xe0   :  { %1027 = vmatmul.mubr.msk.f32.vlgmr.msra.gmra.mrb[8].mxu0 %vm37_vm0, %v2395_v35 }
  0xe1   :  { %1028 = vmatprep.mubr.msk.f32.mxu0 %vm40_vm3, %v2395_v35 }
  0xe4   :  { %1029 = vmatmul.mubr.msk.f32.gmra.mrb[10].mxu0 %vm39_vm2, %v2395_v35 }
 0x16a   :  { %v1104_v52 = vpop.f32.mrb[0].mxu1 }
 0x16b   :  { %v1105_v50 = vpop.f32.mrb[1].mxu1 }
 0x16c   :  { %v1106_v37 = vadd.f32 %v1105_v50, %v1104_v52 }
 0x16e   :  { %v1107_v56 = vpop.f32.mrb[2].mxu1 }
 0x16f   :  { %v1108_v31 = vpop.f32.mrb[3].mxu1 }
 0x170   :  { %v1109_v34 = vadd.f32 %v1108_v31, %v1107_v56 }
 0x173   :  { %v1066_v23 = vpop.f32.mrb[0].mxu0 }
 0x174   :  { %v1067_v17 = vpop.f32.mrb[1].mxu0 }
 0x175   :  { %v1068_v59 = vadd.f32 %v1067_v17, %v1066_v23 }
 0x177   :  { %v437_v40 = vadd.f32 %v1106_v37, %v1068_v59  ;;  %v1069_v60 = vpop.f32.mrb[2].mxu0 }
 0x178   :  { %v1070_v46 = vpop.f32.mrb[3].mxu0 }
 0x179   :  { %v1071_v45 = vadd.f32 %v1070_v46, %v1069_v60 }
 0x17b   :  { %v444_v49 = vadd.f32 %v1109_v34, %v1071_v45 }
 0x18a   :  { %v1180_v47 = vpop.f32.mrb[4].mxu1 }
 0x18b   :  { %v1181_v58 = vpop.f32.mrb[5].mxu1 }
 0x18c   :  { %v1182_v53 = vadd.f32 %v1181_v58, %v1180_v47 }
 0x18e   :  { %v1183_v22 = vpop.f32.mrb[6].mxu1 }
 0x18f   :  { %v1184_v39 = vpop.f32.mrb[7].mxu1 }
 0x190   :  { %v1185_v35 = vadd.f32 %v1184_v39, %v1183_v22 }
 0x193   :  { %v1142_v44 = vpop.f32.mrb[4].mxu0 }
 0x194   :  { %v1143_v54 = vpop.f32.mrb[5].mxu0 }
 0x195   :  { %v1144_v32 = vadd.f32 %v1143_v54, %v1142_v44 }
 0x197   :  { %v582_v51 = vadd.f32 %v1144_v32, %v437_v40  ;;  %v1145_v15 = vpop.f32.mrb[6].mxu0 }
 0x198   :  { %v1146_v13 = vpop.f32.mrb[7].mxu0 }
 0x199   :  { %v1147_v19 = vadd.f32 %v1146_v13, %v1145_v15  ;;  %v699_v16 = vadd.f32 %v1182_v53, %v582_v51 }
 0x19b   :  { %v591_v8 = vadd.f32 %v1147_v19, %v444_v49 }
 0x19d   :  { %v710_v14 = vadd.f32 %v1185_v35, %v591_v8 }
 0x1aa   :  { %v1256_v28 = vpop.f32.mrb[8].mxu1 }
 0x1ab   :  { %v1257_v7 = vpop.f32.mrb[9].mxu1 }
 0x1ac   :  { %v1258_v18 = vadd.f32 %v1257_v7, %v1256_v28 }
 0x1ae   :  { %v1259_v27 = vpop.f32.mrb[10].mxu1 }
 0x1af   :  { %v1260_v57 = vpop.f32.mrb[11].mxu1 }
 0x1b0   :  { %v1261_v20 = vadd.f32 %v1260_v57, %v1259_v27 }
 0x1b3   :  { %v1218_v21 = vpop.f32.mrb[8].mxu0 }
 0x1b4   :  { %v1219_v24 = vpop.f32.mrb[9].mxu0 }
 0x1b5   :  { %v1220_v25 = vadd.f32 %v1219_v24, %v1218_v21 }
 0x1b7   :  { %v878_v1 = vadd.f32 %v1220_v25, %v699_v16  ;;  %v1221_v26 = vpop.f32.mrb[10].mxu0 }
 0x1b8   :  { %v1222_v30 = vpop.f32.mrb[11].mxu0 }
 0x1b9   :  { %v989_v62 = vadd.f32 %v1258_v18, %v878_v1  ;;  %v1223_v3 = vadd.f32 %v1222_v30, %v1221_v26 }
 0x1bb   :  { %999 = vst [vmem:[#allocation5] sm:$0xff] %v989_v62  ;;  %v885_v5 = vadd.f32 %v1223_v3, %v710_v14 }
 0x1bd   :  { %v996_v10 = vadd.f32 %v1261_v20, %v885_v5 }
 0x1bf   :  { %1000 = vst [vmem:[#allocation5 + $0x8] sm:$0xff] %v996_v10 }
 0x1c0   :  { %1495 = shalt.err (!%p1492_p12)
}
 0x1c1   :  { %s1496_s30 = scalar_lea.hbm %s2293_s2, 256 }
 0x1c2   :  { %p1497_p13 = scmp.ne.s32.totalorder %s2293_s2, %s1496_s30  ;;  %p1500_p0 = scmp.lt.u32.totalorder %s1496_s30, %s2293_s2 }
 0x1c4   :  { %p1502_p1 = pnand %p1500_p0, %p1497_p13 }
 0x1c6   :  { %1505 = shalt.err (!%p1502_p1)
}
 0x1c7   :  { %1012 = dma.vmem_to_hbm [thread:$0]  %s1007_s1, 256, %s2293_s2, [#allocation4], %s1511_s19, %s1511_s19, %s1512_s20  }
 0x1c8   :  { %1508 = dma.done.wait [#allocation4], 256  }
 0x1c9   :  { %1509 = vsyncadd [#allocation4], 4294967040 }
 0x1ca   :  { %1016 = vsyncpa [#allocation3], 1 }
 0x1cb   :  { %1017 = vsyncpa [#allocation4], 1 }

</bundles_post_ra>
